<compile_context>
chip_gen: v5e
topology: v5e:2x2
jax: 0.10.0
libtpu: 0.0.40
codegen_flags: <defaults>
</compile_context>

<pallas_src>
import functools

import jax
import jax.numpy as jnp
from jax import lax
from jax.experimental import pallas as pl
from jax.experimental.pallas import tpu as pltpu


_BIAS_ROWS = 8  # 8-row (sublane-aligned) "ones" block that carries the bias


# ---------------------------------------------------------------------------
# Fused kernel: whole DCM forward for one lane-packed batch tile.
# ---------------------------------------------------------------------------
def _dcm_fused_kernel(x_ref, a_ref, w4_ref, b4_ref, o_ref, *, C, Cout, H, W):
    """x_ref : (1, C*H, L)          activations, L = B_tile*W on the lane axis
    a_ref : (3, C*H, 3*C*H + 8)  per-layer fused operators (taps + bias)
    w4_ref: (Cout, C)  SMEM      1x1 conv weights (scalars)
    b4_ref: (Cout,)    SMEM      1x1 conv bias (scalars)
    o_ref : (1, Cout*H, L)       output
    """
    L = x_ref.shape[-1]

    cur = x_ref[0]                                        # (CH, L) f32

    # Per-image column-edge masks.  Lanes are packed as column = b_local*W + x,
    # so x == 0 / x == W-1 mark the replicate-padding boundary of every image
    # (this also stops pltpu.roll from leaking data across image boundaries).
    lane = lax.broadcasted_iota(jnp.int32, (1, L), 1)
    col = lane % W
    left_edge = col == 0
    right_edge = col == (W - 1)

    ones_rows = jnp.ones((_BIAS_ROWS, L), jnp.float32)    # bias rider rows

    # Three fused conv3x3(replicate) + ReLU + residual layers.
    for l in range(3):
        rolled_l = pltpu.roll(cur, 1, 1)                  # [:, x] <- cur[:, x-1]
        rolled_r = pltpu.roll(cur, L - 1, 1)              # [:, x] <- cur[:, x+1]
        cur_l = jnp.where(left_edge, cur, rolled_l)       # clamp at x == 0
        cur_r = jnp.where(right_edge, cur, rolled_r)      # clamp at x == W-1
        # One deep-K MXU matmul per layer (K = 3*C*H + 8); bias folded in.
        x_stack = jnp.concatenate([cur_l, cur, cur_r, ones_rows], axis=0)
        acc = jnp.dot(a_ref[l], x_stack.astype(a_ref.dtype),
                      preferred_element_type=jnp.float32)
        cur = jnp.maximum(acc, 0.0) + cur                 # ReLU, then residual

    # Final 1x1 conv: VPU channel mix with scalar weights from SMEM
    # (no relu, no residual).
    for co in range(Cout):
        o_acc = jnp.zeros((H, L), jnp.float32)
        for ci in range(C):
            o_acc = o_acc + w4_ref[co, ci] * cur[ci * H:(ci + 1) * H, :]
        o_ref[0, co * H:(co + 1) * H, :] = o_acc + b4_ref[co]


# ---------------------------------------------------------------------------
# One-time weight preprocessing (pure glue on parameters, not on activations).
# ---------------------------------------------------------------------------
def _shift_clamp_matrix(n, offset):
    """(n, n) 0/1 matrix M with M[i, j] = 1 iff j == clamp(i + offset, 0, n-1)."""
    src = jnp.clip(jnp.arange(n) + offset, 0, n - 1)
    return (jnp.arange(n)[None, :] == src[:, None]).astype(jnp.float32)


def _build_dcm_operators(params, H, matmul_dtype):
    """Fold conv weights, replicate row-padding, row shifts and bias into one
    (C*H, 3*C*H + 8) operator per layer, column-blocked [kx=0 | kx=1 | kx=2 | bias]."""
    C = params["w1"].shape[1]
    CH = C * H

    # Row (ky) shift-with-clamp matrices: (R[ky] @ p)[y, :] = p[clamp(y+ky-1), :]
    R = jnp.stack([_shift_clamp_matrix(H, ky - 1) for ky in range(3)])   # (3, H, H)

    def layer_op(w, b):
        # a[o*H + y, kx*CH + c*H + j] = sum_ky w[o, c, ky, kx] * R[ky, y, j]
        a = jnp.einsum("ocks,kyj->oyscj", w, R,
                       precision=lax.Precision.HIGHEST).reshape(CH, 3 * CH)
        bias_cols = jnp.zeros((CH, _BIAS_ROWS), jnp.float32)
        bias_cols = bias_cols.at[:, 0].set(jnp.repeat(b, H))
        return jnp.concatenate([a, bias_cols], axis=1)                   # (CH, 3CH+8)

    A = jnp.stack([layer_op(params["w1"], params["b1"]),
                   layer_op(params["w2"], params["b2"]),
                   layer_op(params["w3"], params["b3"])])                # (3, CH, 3CH+8)
    return A.astype(matmul_dtype)


# ---------------------------------------------------------------------------
# Wrapper
# ---------------------------------------------------------------------------
def dcm_forward(x_nchw, params, *, matmul_dtype=jnp.float32, lane_target=128):
    """DCM forward. x_nchw: (B, C, H, W) f32. Returns (B, Cout, H, W) f32."""
    B, C, H, W = x_nchw.shape
    Cout = params["w4"].shape[0]
    CH, CoutH = C * H, Cout * H

    # Batch lane-packing: B_tile images side by side on the lane axis so that
    # every store / MXU pass is >= lane_target wide.  (Use lane_target=256 to
    # fill the 2x256 MXU on v6e/v7x when B is large enough.)
    B_tile = 1 if W >= lane_target else -(-lane_target // W)
    grid_b = max(1, -(-B // B_tile))
    B_pad = grid_b * B_tile
    L = B_tile * W

    A = _build_dcm_operators(params, H, matmul_dtype)
    w4 = params["w4"].astype(jnp.float32)                 # (Cout, C) scalars -> SMEM
    b4 = params["b4"].astype(jnp.float32)                 # (Cout,)   scalars -> SMEM

    # Layout plumbing (lane-dense slabs): lane index = b_local*W + x.
    xp = jnp.pad(x_nchw, ((0, B_pad - B), (0, 0), (0, 0), (0, 0)))
    x2 = (xp.reshape(grid_b, B_tile, C, H, W)
            .transpose(0, 2, 3, 1, 4)
            .reshape(grid_b, CH, L))

    kernel = functools.partial(_dcm_fused_kernel, C=C, Cout=Cout, H=H, W=W)

    out = pl.pallas_call(
        kernel,
        out_shape=jax.ShapeDtypeStruct((grid_b, CoutH, L), jnp.float32),
        grid=(grid_b,),
        in_specs=[
            pl.BlockSpec((1, CH, L), lambda i: (i, 0, 0)),
            # Grid-invariant operator: constant index_map -> fetched once,
            # stays VMEM-resident across the batch grid.
            pl.BlockSpec((3, CH, A.shape[-1]), lambda i: (0, 0, 0)),
            pl.BlockSpec(memory_space=pltpu.MemorySpace.SMEM),   # w4 scalars
            pl.BlockSpec(memory_space=pltpu.MemorySpace.SMEM),   # b4 scalars
        ],
        out_specs=pl.BlockSpec((1, CoutH, L), lambda i: (i, 0, 0)),
        compiler_params=pltpu.CompilerParams(
            dimension_semantics=("parallel",),   # megacore split on multi-step grids
            vmem_limit_bytes=32 * 1024 * 1024,
        ),
    )(x2, A, w4, b4)

    out = (out.reshape(grid_b, Cout, H, B_tile, W)
              .transpose(0, 3, 1, 2, 4)
              .reshape(B_pad, Cout, H, W))
    return out[:B]


# ---------------------------------------------------------------------------
# Deterministic parameter init (mirrors PyTorch Conv2d shapes / init bounds)
# ---------------------------------------------------------------------------
def init_dcm_params(channel, out_channel=None, seed=0):
    if out_channel is None:
        out_channel = channel
    key = jax.random.PRNGKey(seed)
    ks = jax.random.split(key, 8)
    bound3 = 1.0 / jnp.sqrt(channel * 3 * 3)
    bound1 = 1.0 / jnp.sqrt(channel * 1 * 1)

    def u(k, shape, bound):
        return jax.random.uniform(k, shape, jnp.float32, -bound, bound)

    return {
        # 3x3 convs: weight in PyTorch layout (Cout, Cin, kh, kw)
        "w1": u(ks[0], (channel, channel, 3, 3), bound3),
        "b1": u(ks[1], (channel,), bound3),
        "w2": u(ks[2], (channel, channel, 3, 3), bound3),
        "b2": u(ks[3], (channel,), bound3),
        "w3": u(ks[4], (channel, channel, 3, 3), bound3),
        "b3": u(ks[5], (channel,), bound3),
        # 1x1 conv: (Cout, Cin)
        "w4": u(ks[6], (out_channel, channel), bound1),
        "b4": u(ks[7], (out_channel,), bound1),
    }


# ---------------------------------------------------------------------------
# Pure-JAX reference (for correctness check of the fused kernel)
# ---------------------------------------------------------------------------
def _ref_layer(x, w, b):
    xp = jnp.pad(x, ((0, 0), (0, 0), (1, 1), (1, 1)), mode="edge")
    y = lax.conv_general_dilated(
        xp, w, window_strides=(1, 1), padding="VALID",
        dimension_numbers=("NCHW", "OIHW", "NCHW"),
        precision=lax.Precision.HIGHEST)
    return jnp.maximum(y + b[None, :, None, None], 0.0) + x


def dcm_reference(x_nchw, params):
    t = _ref_layer(x_nchw, params["w1"], params["b1"])
    t = _ref_layer(t, params["w2"], params["b2"])
    t = _ref_layer(t, params["w3"], params["b3"])
    y = jnp.einsum("bchw,oc->bohw", t, params["w4"],
                   precision=lax.Precision.HIGHEST)
    return y + params["b4"][None, :, None, None]


# ---------------------------------------------------------------------------
if __name__ == "__main__":
    B, C, H, W = 2, 4, 16, 16
    key = jax.random.PRNGKey(0)
    x = jax.random.normal(key, (B, C, H, W), jnp.float32)

    params = init_dcm_params(C)
    Cout = params["w4"].shape[0]

    fwd = jax.jit(functools.partial(dcm_forward, params=params))
    out = jax.block_until_ready(fwd(x))

    ref = dcm_reference(x, params)
    assert out.shape == (B, Cout, H, W), out.shape
    max_err = float(jnp.max(jnp.abs(out - ref)))
    assert jnp.allclose(out, ref, atol=1e-3, rtol=1e-3), max_err

    print("KERNEL_OK")
</pallas_src>

<mosaic_0001>
module attributes {stable_mosaic.version = 11 : i64} {
  func.func @_dcm_fused_kernel(%arg0: i32, %arg1: memref<1x64x128xf32, #tpu.memory_space<vmem>>, %arg2: memref<3x64x200xf32, #tpu.memory_space<vmem>>, %arg3: memref<4x4xf32, #tpu.memory_space<smem>>, %arg4: memref<4xf32, #tpu.memory_space<smem>>, %arg5: memref<1x64x128xf32, #tpu.memory_space<vmem>>) attributes {dimension_semantics = [#tpu.dimension_semantics<parallel>], iteration_bounds = array<i64: 1>, scalar_prefetch = 0 : i64, scratch_operands = 0 : i64, tpu.core_type = #tpu.core_type<tc>, window_params = [{transform_indices = @transform_0, window_bounds = array<i64: 1, 64, 128>}, {pipeline_mode = #tpu.pipeline_mode<synchronous>, transform_indices = @transform_1, window_bounds = array<i64: 3, 64, 200>}, {transform_indices = @transform_2, window_bounds = array<i64: 4, 4>}, {transform_indices = @transform_3, window_bounds = array<i64: 4>}, {transform_indices = @transform_4, window_bounds = array<i64: 1, 64, 128>}]} {
    %c0 = arith.constant 0 : index
    %c0_0 = arith.constant 0 : index
    %c0_1 = arith.constant 0 : index
    %0 = vector.load %arg1[%c0, %c0_0, %c0_1] : memref<1x64x128xf32, #tpu.memory_space<vmem>>, vector<1x64x128xf32>
    %1 = vector.shape_cast %0 : vector<1x64x128xf32> to vector<64x128xf32>
    %2 = tpu.iota {dimensions = array<i32: 1>} : vector<1x128xi32>
    %c16_i32 = arith.constant 16 : i32
    %c0_i32 = arith.constant 0 : i32
    %3 = arith.cmpi eq, %c16_i32, %c0_i32 : i32
    %c1_i32 = arith.constant 1 : i32
    %4 = arith.select %3, %c1_i32, %c16_i32 : i32
    %5 = vector.broadcast %4 : i32 to vector<1x128xi32>
    %6 = arith.remsi %2, %5 : vector<1x128xi32>
    %c0_i32_2 = arith.constant 0 : i32
    %7 = vector.broadcast %c0_i32_2 : i32 to vector<1x128xi32>
    %8 = arith.cmpi ne, %6, %7 : vector<1x128xi32>
    %c0_i32_3 = arith.constant 0 : i32
    %9 = vector.broadcast %c0_i32_3 : i32 to vector<1x128xi32>
    %10 = arith.cmpi slt, %6, %9 : vector<1x128xi32>
    %c0_i32_4 = arith.constant 0 : i32
    %11 = arith.cmpi slt, %4, %c0_i32_4 : i32
    %12 = vector.broadcast %11 : i1 to vector<1x128xi1>
    %13 = vector.broadcast %12 : vector<1x128xi1> to vector<1x128xi1>
    %14 = arith.xori %10, %13 : vector<1x128xi1>
    %15 = arith.andi %14, %8 : vector<1x128xi1>
    %16 = vector.broadcast %4 : i32 to vector<1x128xi32>
    %17 = arith.addi %6, %16 : vector<1x128xi32>
    %18 = arith.select %15, %17, %6 : vector<1x128xi1>, vector<1x128xi32>
    %c0_i32_5 = arith.constant 0 : i32
    %19 = vector.broadcast %c0_i32_5 : i32 to vector<1x128xi32>
    %20 = arith.cmpi eq, %18, %19 : vector<1x128xi32>
    %c15_i32 = arith.constant 15 : i32
    %21 = vector.broadcast %c15_i32 : i32 to vector<1x128xi32>
    %22 = arith.cmpi eq, %18, %21 : vector<1x128xi32>
    %cst = arith.constant 1.000000e+00 : f32
    %23 = vector.broadcast %cst : f32 to vector<8x128xf32>
    %c1_i32_6 = arith.constant 1 : i32
    %24 = tpu.dynamic_rotate %1 by %c1_i32_6 dim 1 : vector<64x128xf32>, i32 -> vector<64x128xf32>
    %c127_i32 = arith.constant 127 : i32
    %25 = tpu.dynamic_rotate %1 by %c127_i32 dim 1 : vector<64x128xf32>, i32 -> vector<64x128xf32>
    %26 = vector.shape_cast %20 : vector<1x128xi1> to vector<1x128xi1>
    %27 = vector.broadcast %26 : vector<1x128xi1> to vector<64x128xi1>
    %28 = arith.select %27, %1, %24 : vector<64x128xi1>, vector<64x128xf32>
    %29 = vector.shape_cast %22 : vector<1x128xi1> to vector<1x128xi1>
    %30 = vector.broadcast %29 : vector<1x128xi1> to vector<64x128xi1>
    %31 = arith.select %30, %1, %25 : vector<64x128xi1>, vector<64x128xf32>
    %32 = tpu.concatenate %28, %1, %31, %23 in 0 : vector<64x128xf32>, vector<64x128xf32>, vector<64x128xf32>, vector<8x128xf32> -> vector<200x128xf32>
    %c0_7 = arith.constant 0 : index
    %c0_8 = arith.constant 0 : index
    %c0_9 = arith.constant 0 : index
    %33 = vector.load %arg2[%c0_7, %c0_8, %c0_9] : memref<3x64x200xf32, #tpu.memory_space<vmem>>, vector<1x64x200xf32>
    %34 = vector.shape_cast %33 : vector<1x64x200xf32> to vector<64x200xf32>
    %cst_10 = arith.constant dense<0.000000e+00> : vector<64x128xf32>
    %35 = tpu.matmul %34, %32, %cst_10 {dimension_numbers = #tpu.dot_dimension_numbers<[1], [0], [0], [1], [0, 0, 1, 1], [], []>} : vector<64x200xf32>, vector<200x128xf32>, vector<64x128xf32> -> vector<64x128xf32>
    %cst_11 = arith.constant 0.000000e+00 : f32
    %36 = vector.broadcast %cst_11 : f32 to vector<64x128xf32>
    %37 = arith.maximumf %35, %36 : vector<64x128xf32>
    %38 = arith.addf %37, %1 : vector<64x128xf32>
    %c1_i32_12 = arith.constant 1 : i32
    %39 = tpu.dynamic_rotate %38 by %c1_i32_12 dim 1 : vector<64x128xf32>, i32 -> vector<64x128xf32>
    %c127_i32_13 = arith.constant 127 : i32
    %40 = tpu.dynamic_rotate %38 by %c127_i32_13 dim 1 : vector<64x128xf32>, i32 -> vector<64x128xf32>
    %41 = vector.shape_cast %20 : vector<1x128xi1> to vector<1x128xi1>
    %42 = vector.broadcast %41 : vector<1x128xi1> to vector<64x128xi1>
    %43 = arith.select %42, %38, %39 : vector<64x128xi1>, vector<64x128xf32>
    %44 = vector.shape_cast %22 : vector<1x128xi1> to vector<1x128xi1>
    %45 = vector.broadcast %44 : vector<1x128xi1> to vector<64x128xi1>
    %46 = arith.select %45, %38, %40 : vector<64x128xi1>, vector<64x128xf32>
    %47 = tpu.concatenate %43, %38, %46, %23 in 0 : vector<64x128xf32>, vector<64x128xf32>, vector<64x128xf32>, vector<8x128xf32> -> vector<200x128xf32>
    %c1 = arith.constant 1 : index
    %c0_14 = arith.constant 0 : index
    %c0_15 = arith.constant 0 : index
    %48 = vector.load %arg2[%c1, %c0_14, %c0_15] : memref<3x64x200xf32, #tpu.memory_space<vmem>>, vector<1x64x200xf32>
    %49 = vector.shape_cast %48 : vector<1x64x200xf32> to vector<64x200xf32>
    %cst_16 = arith.constant dense<0.000000e+00> : vector<64x128xf32>
    %50 = tpu.matmul %49, %47, %cst_16 {dimension_numbers = #tpu.dot_dimension_numbers<[1], [0], [0], [1], [0, 0, 1, 1], [], []>} : vector<64x200xf32>, vector<200x128xf32>, vector<64x128xf32> -> vector<64x128xf32>
    %cst_17 = arith.constant 0.000000e+00 : f32
    %51 = vector.broadcast %cst_17 : f32 to vector<64x128xf32>
    %52 = arith.maximumf %50, %51 : vector<64x128xf32>
    %53 = arith.addf %52, %38 : vector<64x128xf32>
    %c1_i32_18 = arith.constant 1 : i32
    %54 = tpu.dynamic_rotate %53 by %c1_i32_18 dim 1 : vector<64x128xf32>, i32 -> vector<64x128xf32>
    %c127_i32_19 = arith.constant 127 : i32
    %55 = tpu.dynamic_rotate %53 by %c127_i32_19 dim 1 : vector<64x128xf32>, i32 -> vector<64x128xf32>
    %56 = vector.shape_cast %20 : vector<1x128xi1> to vector<1x128xi1>
    %57 = vector.broadcast %56 : vector<1x128xi1> to vector<64x128xi1>
    %58 = arith.select %57, %53, %54 : vector<64x128xi1>, vector<64x128xf32>
    %59 = vector.shape_cast %22 : vector<1x128xi1> to vector<1x128xi1>
    %60 = vector.broadcast %59 : vector<1x128xi1> to vector<64x128xi1>
    %61 = arith.select %60, %53, %55 : vector<64x128xi1>, vector<64x128xf32>
    %62 = tpu.concatenate %58, %53, %61, %23 in 0 : vector<64x128xf32>, vector<64x128xf32>, vector<64x128xf32>, vector<8x128xf32> -> vector<200x128xf32>
    %c2 = arith.constant 2 : index
    %c0_20 = arith.constant 0 : index
    %c0_21 = arith.constant 0 : index
    %63 = vector.load %arg2[%c2, %c0_20, %c0_21] : memref<3x64x200xf32, #tpu.memory_space<vmem>>, vector<1x64x200xf32>
    %64 = vector.shape_cast %63 : vector<1x64x200xf32> to vector<64x200xf32>
    %cst_22 = arith.constant dense<0.000000e+00> : vector<64x128xf32>
    %65 = tpu.matmul %64, %62, %cst_22 {dimension_numbers = #tpu.dot_dimension_numbers<[1], [0], [0], [1], [0, 0, 1, 1], [], []>} : vector<64x200xf32>, vector<200x128xf32>, vector<64x128xf32> -> vector<64x128xf32>
    %cst_23 = arith.constant 0.000000e+00 : f32
    %66 = vector.broadcast %cst_23 : f32 to vector<64x128xf32>
    %67 = arith.maximumf %65, %66 : vector<64x128xf32>
    %68 = arith.addf %67, %53 : vector<64x128xf32>
    %cst_24 = arith.constant 0.000000e+00 : f32
    %69 = vector.broadcast %cst_24 : f32 to vector<16x128xf32>
    %c0_25 = arith.constant 0 : index
    %c0_26 = arith.constant 0 : index
    %70 = memref.load %arg3[%c0_25, %c0_26] : memref<4x4xf32, #tpu.memory_space<smem>>
    %71 = vector.extract_strided_slice %68 {offsets = [0, 0], sizes = [16, 128], strides = [1, 1]} : vector<64x128xf32> to vector<16x128xf32>
    %72 = vector.broadcast %70 : f32 to vector<16x128xf32>
    %73 = arith.mulf %72, %71 : vector<16x128xf32>
    %74 = arith.addf %69, %73 : vector<16x128xf32>
    %c0_27 = arith.constant 0 : index
    %c1_28 = arith.constant 1 : index
    %75 = memref.load %arg3[%c0_27, %c1_28] : memref<4x4xf32, #tpu.memory_space<smem>>
    %76 = vector.extract_strided_slice %68 {offsets = [16, 0], sizes = [16, 128], strides = [1, 1]} : vector<64x128xf32> to vector<16x128xf32>
    %77 = vector.broadcast %75 : f32 to vector<16x128xf32>
    %78 = arith.mulf %77, %76 : vector<16x128xf32>
    %79 = arith.addf %74, %78 : vector<16x128xf32>
    %c0_29 = arith.constant 0 : index
    %c2_30 = arith.constant 2 : index
    %80 = memref.load %arg3[%c0_29, %c2_30] : memref<4x4xf32, #tpu.memory_space<smem>>
    %81 = vector.extract_strided_slice %68 {offsets = [32, 0], sizes = [16, 128], strides = [1, 1]} : vector<64x128xf32> to vector<16x128xf32>
    %82 = vector.broadcast %80 : f32 to vector<16x128xf32>
    %83 = arith.mulf %82, %81 : vector<16x128xf32>
    %84 = arith.addf %79, %83 : vector<16x128xf32>
    %c0_31 = arith.constant 0 : index
    %c3 = arith.constant 3 : index
    %85 = memref.load %arg3[%c0_31, %c3] : memref<4x4xf32, #tpu.memory_space<smem>>
    %86 = vector.extract_strided_slice %68 {offsets = [48, 0], sizes = [16, 128], strides = [1, 1]} : vector<64x128xf32> to vector<16x128xf32>
    %87 = vector.broadcast %85 : f32 to vector<16x128xf32>
    %88 = arith.mulf %87, %86 : vector<16x128xf32>
    %89 = arith.addf %84, %88 : vector<16x128xf32>
    %c0_32 = arith.constant 0 : index
    %90 = memref.load %arg4[%c0_32] : memref<4xf32, #tpu.memory_space<smem>>
    %91 = vector.broadcast %90 : f32 to vector<16x128xf32>
    %92 = arith.addf %89, %91 : vector<16x128xf32>
    %c0_33 = arith.constant 0 : index
    %c0_34 = arith.constant 0 : index
    %c0_35 = arith.constant 0 : index
    %93 = vector.load %arg5[%c0_33, %c0_34, %c0_35] : memref<1x64x128xf32, #tpu.memory_space<vmem>>, vector<1x16x128xf32>
    %94 = vector.shape_cast %93 : vector<1x16x128xf32> to vector<16x128xf32>
    %95 = vector.shape_cast %92 : vector<16x128xf32> to vector<1x16x128xf32>
    tpu.vector_store %arg5[%c0_33, %c0_34, %c0_35], %95 {strides = array<i32>} : memref<1x64x128xf32, #tpu.memory_space<vmem>>, vector<1x16x128xf32>,
    %cst_36 = arith.constant 0.000000e+00 : f32
    %96 = vector.broadcast %cst_36 : f32 to vector<16x128xf32>
    %c1_37 = arith.constant 1 : index
    %c0_38 = arith.constant 0 : index
    %97 = memref.load %arg3[%c1_37, %c0_38] : memref<4x4xf32, #tpu.memory_space<smem>>
    %98 = vector.extract_strided_slice %68 {offsets = [0, 0], sizes = [16, 128], strides = [1, 1]} : vector<64x128xf32> to vector<16x128xf32>
    %99 = vector.broadcast %97 : f32 to vector<16x128xf32>
    %100 = arith.mulf %99, %98 : vector<16x128xf32>
    %101 = arith.addf %96, %100 : vector<16x128xf32>
    %c1_39 = arith.constant 1 : index
    %c1_40 = arith.constant 1 : index
    %102 = memref.load %arg3[%c1_39, %c1_40] : memref<4x4xf32, #tpu.memory_space<smem>>
    %103 = vector.extract_strided_slice %68 {offsets = [16, 0], sizes = [16, 128], strides = [1, 1]} : vector<64x128xf32> to vector<16x128xf32>
    %104 = vector.broadcast %102 : f32 to vector<16x128xf32>
    %105 = arith.mulf %104, %103 : vector<16x128xf32>
    %106 = arith.addf %101, %105 : vector<16x128xf32>
    %c1_41 = arith.constant 1 : index
    %c2_42 = arith.constant 2 : index
    %107 = memref.load %arg3[%c1_41, %c2_42] : memref<4x4xf32, #tpu.memory_space<smem>>
    %108 = vector.extract_strided_slice %68 {offsets = [32, 0], sizes = [16, 128], strides = [1, 1]} : vector<64x128xf32> to vector<16x128xf32>
    %109 = vector.broadcast %107 : f32 to vector<16x128xf32>
    %110 = arith.mulf %109, %108 : vector<16x128xf32>
    %111 = arith.addf %106, %110 : vector<16x128xf32>
    %c1_43 = arith.constant 1 : index
    %c3_44 = arith.constant 3 : index
    %112 = memref.load %arg3[%c1_43, %c3_44] : memref<4x4xf32, #tpu.memory_space<smem>>
    %113 = vector.extract_strided_slice %68 {offsets = [48, 0], sizes = [16, 128], strides = [1, 1]} : vector<64x128xf32> to vector<16x128xf32>
    %114 = vector.broadcast %112 : f32 to vector<16x128xf32>
    %115 = arith.mulf %114, %113 : vector<16x128xf32>
    %116 = arith.addf %111, %115 : vector<16x128xf32>
    %c1_45 = arith.constant 1 : index
    %117 = memref.load %arg4[%c1_45] : memref<4xf32, #tpu.memory_space<smem>>
    %118 = vector.broadcast %117 : f32 to vector<16x128xf32>
    %119 = arith.addf %116, %118 : vector<16x128xf32>
    %c0_46 = arith.constant 0 : index
    %c16 = arith.constant 16 : index
    %c0_47 = arith.constant 0 : index
    %120 = vector.load %arg5[%c0_46, %c16, %c0_47] : memref<1x64x128xf32, #tpu.memory_space<vmem>>, vector<1x16x128xf32>
    %121 = vector.shape_cast %120 : vector<1x16x128xf32> to vector<16x128xf32>
    %122 = vector.shape_cast %119 : vector<16x128xf32> to vector<1x16x128xf32>
    tpu.vector_store %arg5[%c0_46, %c16, %c0_47], %122 {strides = array<i32>} : memref<1x64x128xf32, #tpu.memory_space<vmem>>, vector<1x16x128xf32>,
    %cst_48 = arith.constant 0.000000e+00 : f32
    %123 = vector.broadcast %cst_48 : f32 to vector<16x128xf32>
    %c2_49 = arith.constant 2 : index
    %c0_50 = arith.constant 0 : index
    %124 = memref.load %arg3[%c2_49, %c0_50] : memref<4x4xf32, #tpu.memory_space<smem>>
    %125 = vector.extract_strided_slice %68 {offsets = [0, 0], sizes = [16, 128], strides = [1, 1]} : vector<64x128xf32> to vector<16x128xf32>
    %126 = vector.broadcast %124 : f32 to vector<16x128xf32>
    %127 = arith.mulf %126, %125 : vector<16x128xf32>
    %128 = arith.addf %123, %127 : vector<16x128xf32>
    %c2_51 = arith.constant 2 : index
    %c1_52 = arith.constant 1 : index
    %129 = memref.load %arg3[%c2_51, %c1_52] : memref<4x4xf32, #tpu.memory_space<smem>>
    %130 = vector.extract_strided_slice %68 {offsets = [16, 0], sizes = [16, 128], strides = [1, 1]} : vector<64x128xf32> to vector<16x128xf32>
    %131 = vector.broadcast %129 : f32 to vector<16x128xf32>
    %132 = arith.mulf %131, %130 : vector<16x128xf32>
    %133 = arith.addf %128, %132 : vector<16x128xf32>
    %c2_53 = arith.constant 2 : index
    %c2_54 = arith.constant 2 : index
    %134 = memref.load %arg3[%c2_53, %c2_54] : memref<4x4xf32, #tpu.memory_space<smem>>
    %135 = vector.extract_strided_slice %68 {offsets = [32, 0], sizes = [16, 128], strides = [1, 1]} : vector<64x128xf32> to vector<16x128xf32>
    %136 = vector.broadcast %134 : f32 to vector<16x128xf32>
    %137 = arith.mulf %136, %135 : vector<16x128xf32>
    %138 = arith.addf %133, %137 : vector<16x128xf32>
    %c2_55 = arith.constant 2 : index
    %c3_56 = arith.constant 3 : index
    %139 = memref.load %arg3[%c2_55, %c3_56] : memref<4x4xf32, #tpu.memory_space<smem>>
    %140 = vector.extract_strided_slice %68 {offsets = [48, 0], sizes = [16, 128], strides = [1, 1]} : vector<64x128xf32> to vector<16x128xf32>
    %141 = vector.broadcast %139 : f32 to vector<16x128xf32>
    %142 = arith.mulf %141, %140 : vector<16x128xf32>
    %143 = arith.addf %138, %142 : vector<16x128xf32>
    %c2_57 = arith.constant 2 : index
    %144 = memref.load %arg4[%c2_57] : memref<4xf32, #tpu.memory_space<smem>>
    %145 = vector.broadcast %144 : f32 to vector<16x128xf32>
    %146 = arith.addf %143, %145 : vector<16x128xf32>
    %c0_58 = arith.constant 0 : index
    %c32 = arith.constant 32 : index
    %c0_59 = arith.constant 0 : index
    %147 = vector.load %arg5[%c0_58, %c32, %c0_59] : memref<1x64x128xf32, #tpu.memory_space<vmem>>, vector<1x16x128xf32>
    %148 = vector.shape_cast %147 : vector<1x16x128xf32> to vector<16x128xf32>
    %149 = vector.shape_cast %146 : vector<16x128xf32> to vector<1x16x128xf32>
    tpu.vector_store %arg5[%c0_58, %c32, %c0_59], %149 {strides = array<i32>} : memref<1x64x128xf32, #tpu.memory_space<vmem>>, vector<1x16x128xf32>,
    %cst_60 = arith.constant 0.000000e+00 : f32
    %150 = vector.broadcast %cst_60 : f32 to vector<16x128xf32>
    %c3_61 = arith.constant 3 : index
    %c0_62 = arith.constant 0 : index
    %151 = memref.load %arg3[%c3_61, %c0_62] : memref<4x4xf32, #tpu.memory_space<smem>>
    %152 = vector.extract_strided_slice %68 {offsets = [0, 0], sizes = [16, 128], strides = [1, 1]} : vector<64x128xf32> to vector<16x128xf32>
    %153 = vector.broadcast %151 : f32 to vector<16x128xf32>
    %154 = arith.mulf %153, %152 : vector<16x128xf32>
    %155 = arith.addf %150, %154 : vector<16x128xf32>
    %c3_63 = arith.constant 3 : index
    %c1_64 = arith.constant 1 : index
    %156 = memref.load %arg3[%c3_63, %c1_64] : memref<4x4xf32, #tpu.memory_space<smem>>
    %157 = vector.extract_strided_slice %68 {offsets = [16, 0], sizes = [16, 128], strides = [1, 1]} : vector<64x128xf32> to vector<16x128xf32>
    %158 = vector.broadcast %156 : f32 to vector<16x128xf32>
    %159 = arith.mulf %158, %157 : vector<16x128xf32>
    %160 = arith.addf %155, %159 : vector<16x128xf32>
    %c3_65 = arith.constant 3 : index
    %c2_66 = arith.constant 2 : index
    %161 = memref.load %arg3[%c3_65, %c2_66] : memref<4x4xf32, #tpu.memory_space<smem>>
    %162 = vector.extract_strided_slice %68 {offsets = [32, 0], sizes = [16, 128], strides = [1, 1]} : vector<64x128xf32> to vector<16x128xf32>
    %163 = vector.broadcast %161 : f32 to vector<16x128xf32>
    %164 = arith.mulf %163, %162 : vector<16x128xf32>
    %165 = arith.addf %160, %164 : vector<16x128xf32>
    %c3_67 = arith.constant 3 : index
    %c3_68 = arith.constant 3 : index
    %166 = memref.load %arg3[%c3_67, %c3_68] : memref<4x4xf32, #tpu.memory_space<smem>>
    %167 = vector.extract_strided_slice %68 {offsets = [48, 0], sizes = [16, 128], strides = [1, 1]} : vector<64x128xf32> to vector<16x128xf32>
    %168 = vector.broadcast %166 : f32 to vector<16x128xf32>
    %169 = arith.mulf %168, %167 : vector<16x128xf32>
    %170 = arith.addf %165, %169 : vector<16x128xf32>
    %c3_69 = arith.constant 3 : index
    %171 = memref.load %arg4[%c3_69] : memref<4xf32, #tpu.memory_space<smem>>
    %172 = vector.broadcast %171 : f32 to vector<16x128xf32>
    %173 = arith.addf %170, %172 : vector<16x128xf32>
    %c0_70 = arith.constant 0 : index
    %c48 = arith.constant 48 : index
    %c0_71 = arith.constant 0 : index
    %174 = vector.load %arg5[%c0_70, %c48, %c0_71] : memref<1x64x128xf32, #tpu.memory_space<vmem>>, vector<1x16x128xf32>
    %175 = vector.shape_cast %174 : vector<1x16x128xf32> to vector<16x128xf32>
    %176 = vector.shape_cast %173 : vector<16x128xf32> to vector<1x16x128xf32>
    tpu.vector_store %arg5[%c0_70, %c48, %c0_71], %176 {strides = array<i32>} : memref<1x64x128xf32, #tpu.memory_space<vmem>>, vector<1x16x128xf32>,
    return
  }
  func.func @transform_0(%arg0: i32) -> (i32, i32, i32) {
    %c0_i32 = arith.constant 0 : i32
    %c0_i32_0 = arith.constant 0 : i32
    %c0_i32_1 = arith.constant 0 : i32
    return %arg0, %c0_i32, %c0_i32_0 : i32, i32, i32
  }
  func.func @transform_1(%arg0: i32) -> (i32, i32, i32) {
    %c0_i32 = arith.constant 0 : i32
    %c0_i32_0 = arith.constant 0 : i32
    %c0_i32_1 = arith.constant 0 : i32
    %c0_i32_2 = arith.constant 0 : i32
    return %c0_i32, %c0_i32_0, %c0_i32_1 : i32, i32, i32
  }
  func.func @transform_2(%arg0: i32) -> (i32, i32) {
    %c0_i32 = arith.constant 0 : i32
    %c0_i32_0 = arith.constant 0 : i32
    %c0_i32_1 = arith.constant 0 : i32
    return %c0_i32, %c0_i32_0 : i32, i32
  }
  func.func @transform_3(%arg0: i32) -> i32 {
    %c0_i32 = arith.constant 0 : i32
    %c0_i32_0 = arith.constant 0 : i32
    return %c0_i32 : i32
  }
  func.func @transform_4(%arg0: i32) -> (i32, i32, i32) {
    %c0_i32 = arith.constant 0 : i32
    %c0_i32_0 = arith.constant 0 : i32
    %c0_i32_1 = arith.constant 0 : i32
    return %arg0, %c0_i32, %c0_i32_0 : i32, i32, i32
  }
}

</mosaic_0001>

<bundles_post_ra>
// kernel: dcm_forward.1
= control target key start
LH: loop header
LB: loop body
LE: loop exit
PB: predicated region body
PF: predicated region fallthrough
CT: control target
= control target key end

     0   :  { %9 = vsyncpa [#allocation3], 0  ;;  %s1627_s0 = inlined_call_operand.vmem [shape: f32[1,64,128], index: 0, kind: input, shape index: {}]   ;;  %s1628_s1 = inlined_call_operand.vmem [shape: f32[3,64,200], index: 1, kind: input, shape index: {}]   ;;  %s1629_s2 = inlined_call_operand.vmem [shape: f32[4,4], index: 2, kind: input, shape index: {}]   ;;  %s1630_s3 = inlined_call_operand.vmem [shape: f32[4], index: 3, kind: input, shape index: {}]   ;;  %s1631_s4 = inlined_call_operand.vmem [shape: f32[1,64,128], index: 4, kind: output, shape index: {}]  }
   0x1   :  { %s20_s17 = sshll.u32 %s1629_s2, 4  ;;  %s21_s17 = int_to_ptr.vmem [resolvable:$true] %s20_s17 }
   0x2   :  { %10 = vsyncpa [#allocation5], 0  ;;  %s29_s20 = sshll.u32 %s1630_s3, 4  ;;  %s1002_s21 = smov [#allocation2]   ;;  %s30_s20 = int_to_ptr.vmem [resolvable:$true] %s29_s20 }
   0x3   :  { %23 = dma.vmem_to_smem %s21_s17, 64, %s1002_s21, [#allocation3]  }
   0x4   :  { %s1003_s22 = smov [#allocation4]  }
   0x5   :  { %32 = dma.vmem_to_smem %s30_s20, 16, %s1003_s22, [#allocation5]  }
   0x6   :  { %998 = dma.done.wait [#allocation3], 64  }
   0x7   :  { %999 = vsyncadd [#allocation3], 4294967232 }
   0x8   :  { %1000 = dma.done.wait [#allocation5], 16  }
   0x9   :  { %1001 = vsyncadd [#allocation5], 4294967280 }
   0xa   :  { %41 = sfence }
   0xb   :  { %v1041_v0 = vld [vmem:[%s1627_s0 + $0x30] sm:$0xff]  ;;  %v1046_v1 = vld [vmem:[%s1627_s0 + $0x38] sm:$0xff]  ;;  %s1004_s29 = smov 1   ;;  %s1005_s30 = smov 127   ;;  %v1068_v6 = vld [vmem:[%s1627_s0 + $0x20] sm:$0xff]  ;;  %v50_v12 = vlaneseq  ;;  %v1006_v15 = vmov 1.0  }
   0xc   :  { %v854_v2 = vpack.i.bf16 %v1041_v0, %v1046_v1  ;;  %v1053_v3 = vld [vmem:[%s1627_s0 + $0x10] sm:$0xff]  ;;  %v1058_v4 = vld [vmem:[%s1627_s0 + $0x18] sm:$0xff]  ;;  %159 = vmatpush.msra.mxu0 %v1046_v1  ;;  %v1073_v7 = vld [vmem:[%s1627_s0 + $0x28] sm:$0xff]  ;;  %831 = vmatpush.msra.mxu1 %v1006_v15  ;;  %vm134_vm2 = vcmask 588800   ;;  %s1523_s23 = sld [smem:[#allocation2]] }
   0xd   :  { %v864_v5 = vpack.i.bf16 %v1053_v3, %v1058_v4  ;;  %v1080_v8 = vld [vmem:[%s1627_s0] sm:$0xff]  ;;  %v1085_v9 = vld [vmem:[%s1627_s0 + $0x8] sm:$0xff]  ;;  %v859_v10 = vpack.i.bf16 %v1068_v6, %v1073_v7  ;;  %v51_v14 = vand.u32 127, %v50_v12  ;;  %840 = vmatpush.msra.mxu3 %v1006_v15  ;;  %v125_v59 = vld [vmem:[%s1628_s1 + $0x38] sm:$0xff]  ;;  %s1525_s24 = sld [smem:[#allocation2 + $0x80]] }
   0xe   :  { %855 = vrot.lane.b32.xlu0 %v854_v2, %s1004_s29  ;;  %875 = vrot.lane.b32.xlu2 %v854_v2, %s1005_s30  ;;  %v869_v11 = vpack.i.bf16 %v1080_v8, %v1085_v9  ;;  %v118_v55 = vld [vmem:[%s1628_s1] sm:$0xff]  ;;  %v120_v60 = vld [vmem:[%s1628_s1 + $0x10] sm:$0xff]  ;;  %s1527_s2 = sld [smem:[#allocation2 + $0x100]] }
   0xf   :  { %865 = vrot.lane.b32.xlu1 %v864_v5, %s1004_s29  ;;  %160 = vmatpush.msra.mxu0 %v1041_v0  ;;  %v56_v18 = vand.u32 15, %v51_v14  ;;  %v127_v61 = vld [vmem:[%s1628_s1 + $0x48] sm:$0xff]  ;;  %v122_v62 = vld [vmem:[%s1628_s1 + $0x20] sm:$0xff]  ;;  %v129_v63 = vld [vmem:[%s1628_s1 + $0x58] sm:$0xff]  ;;  %s1529_s25 = sld [smem:[#allocation2 + $0x180]] }
  0x10   :  { %v124_v2 = vld [vmem:[%s1628_s1 + $0x30] sm:$0xff]  ;;  %v793_v24 = vld [vmem:[%s1628_s1 + $0x120] sm:$0xff]  ;;  %s1531_s3 = sld [smem:[#allocation2 + $0x1]] }
  0x11   :  { %161 = vmatpush.msra.mxu0 %v1073_v7  ;;  %vm1104_vm0 = vcmp.eq.s32.totalorder %v56_v18, 15  ;;  %vm1114_vm1 = vcmp.eq.s32.totalorder %v56_v18, 0  ;;  %v128_v12 = vld [vmem:[%s1628_s1 + $0x50] sm:$0xff]  ;;  %v123_v18 = vld [vmem:[%s1628_s1 + $0x28] sm:$0xff]  ;;  %s1535_s26 = sld [smem:[#allocation2 + $0x101]] }
  0x12   :  { %v132_v14 = vld [vmem:[%s1628_s1 + $0x70] sm:$0xff]  ;;  %s1537_s27 = sld [smem:[#allocation2 + $0x181]] }
  0x13   :  { %162 = vmatpush.msra.mxu0 %v1068_v6  ;;  %s1539_s28 = sld [smem:[#allocation2 + $0x2]] }
  0x14   :  { %s1541_s5 = sld [smem:[#allocation2 + $0x82]] }
  0x15   :  { %163 = vmatpush.msra.mxu0 %v1058_v4  ;;  %s1543_s6 = sld [smem:[#allocation2 + $0x102]] }
  0x16   :  { %860 = vrot.lane.b32.xlu0 %v859_v10, %s1004_s29  ;;  %880 = vrot.lane.b32.xlu2 %v859_v10, %s1005_s30  ;;  %v126_v10 = vld [vmem:[%s1628_s1 + $0x40] sm:$0xff]  ;;  %s1545_s7 = sld [smem:[#allocation2 + $0x182]] }
  0x17   :  { %870 = vrot.lane.b32.xlu1 %v869_v11, %s1004_s29  ;;  %164 = vmatpush.msra.mxu0 %v1053_v3  ;;  %s1547_s8 = sld [smem:[#allocation2 + $0x3]] }
  0x18   :  { %s1550_s9 = sld [smem:[#allocation2 + $0x83]] }
  0x19   :  { %165 = vmatpush.msra.mxu0 %v1085_v9  ;;  %s1553_s10 = sld [smem:[#allocation2 + $0x103]] }
  0x1a   :  { %s1558_s11 = sld [smem:[#allocation2 + $0x183]] }
  0x1b   :  { %166 = vmatpush.msra.mxu0 %v1080_v8  ;;  %s1564_s12 = sld [smem:[#allocation4]] }
  0x1c   :  { %s1569_s0 = sld [smem:[#allocation4 + $0x1]] }
  0x1d   :  { %s1571_s13 = sld [smem:[#allocation4 + $0x2]] }
  0x1e   :  { %885 = vrot.lane.b32.xlu0 %v864_v5, %s1005_s30  ;;  %v131_v5 = vld [vmem:[%s1628_s1 + $0x68] sm:$0xff]  ;;  %s1577_s14 = sld [smem:[#allocation4 + $0x3]] }
  0x1f   :  { %890 = vrot.lane.b32.xlu1 %v869_v11, %s1005_s30  ;;  %v133_v11 = vld [vmem:[%s1628_s1 + $0x78] sm:$0xff] }
  0x68   :  { %v876_v13 = vpop.permute.xlu2 %875 }
  0x69   :  { %v878_v16 = vunpack.i.h.bf16 %v876_v13  ;;  %v877_v17 = vunpack.i.l.bf16 %v876_v13  ;;  %v130_v13 = vld [vmem:[%s1628_s1 + $0x60] sm:$0xff] }
  0x6b   :  { %v117_v20 = vsel %vm1104_vm0, %v1046_v1, %v877_v17  ;;  %v116_v22 = vsel %vm1104_vm0, %v1041_v0, %v878_v16  ;;  %v119_v16 = vld [vmem:[%s1628_s1 + $0x8] sm:$0xff]  ;;  %v121_v17 = vld [vmem:[%s1628_s1 + $0x18] sm:$0xff] }
  0x6c   :  { %832 = vmatpush.msra.mxu1 %v117_v20 }
  0x6e   :  { %833 = vmatpush.msra.mxu1 %v116_v22 }
  0x70   :  { %v881_v21 = vpop.permute.xlu2 %880 }
  0x71   :  { %v883_v25 = vunpack.i.h.bf16 %v881_v21  ;;  %v882_v26 = vunpack.i.l.bf16 %v881_v21 }
  0x73   :  { %v115_v30 = vsel %vm1104_vm0, %v1073_v7, %v882_v26  ;;  %v114_v32 = vsel %vm1104_vm0, %v1068_v6, %v883_v25 }
  0x74   :  { %834 = vmatpush.msra.mxu1 %v115_v30 }
  0x76   :  { %835 = vmatpush.msra.mxu1 %v114_v32 }
  0x80   :  { %v856_v23 = vpop.permute.xlu0 %855 }
  0x81   :  { %v858_v27 = vunpack.i.h.bf16 %v856_v23  ;;  %v857_v28 = vunpack.i.l.bf16 %v856_v23  ;;  %v866_v29 = vpop.permute.xlu1 %865 }
  0x82   :  { %v867_v38 = vunpack.i.l.bf16 %v866_v29  ;;  %v868_v40 = vunpack.i.h.bf16 %v866_v29 }
  0x83   :  { %v107_v31 = vsel %vm1114_vm1, %v1046_v1, %v857_v28  ;;  %v106_v33 = vsel %vm1114_vm1, %v1041_v0, %v858_v27 }
  0x84   :  { %167 = vmatpush.msra.mxu0 %v107_v31  ;;  %v103_v43 = vsel %vm1114_vm1, %v1058_v4, %v867_v38  ;;  %v102_v44 = vsel %vm1114_vm1, %v1053_v3, %v868_v40 }
  0x86   :  { %168 = vmatpush.msra.mxu0 %v106_v33 }
  0x88   :  { %v861_v34 = vpop.permute.xlu0 %860 }
  0x89   :  { %v863_v35 = vunpack.i.h.bf16 %v861_v34  ;;  %v862_v36 = vunpack.i.l.bf16 %v861_v34  ;;  %v871_v37 = vpop.permute.xlu1 %870 }
  0x8a   :  { %v872_v42 = vunpack.i.l.bf16 %v871_v37  ;;  %v873_v46 = vunpack.i.h.bf16 %v871_v37 }
  0x8b   :  { %v105_v39 = vsel %vm1114_vm1, %v1073_v7, %v862_v36  ;;  %v104_v41 = vsel %vm1114_vm1, %v1068_v6, %v863_v35 }
  0x8c   :  { %169 = vmatpush.msra.mxu0 %v105_v39  ;;  %v101_v47 = vsel %vm1114_vm1, %v1085_v9, %v872_v42  ;;  %v100_v56 = vsel %vm1114_vm1, %v1080_v8, %v873_v46 }
  0x8e   :  { %170 = vmatpush.msra.mxu0 %v104_v41 }
  0x90   :  { %171 = vmatpush.msra.mxu0 %v103_v43  ;;  %v886_v45 = vpop.permute.xlu0 %885 }
  0x91   :  { %v888_v48 = vunpack.i.h.bf16 %v886_v45  ;;  %v887_v49 = vunpack.i.l.bf16 %v886_v45  ;;  %v891_v50 = vpop.permute.xlu1 %890 }
  0x92   :  { %172 = vmatpush.msra.mxu0 %v102_v44  ;;  %v892_v51 = vunpack.i.l.bf16 %v891_v50  ;;  %v893_v53 = vunpack.i.h.bf16 %v891_v50 }
  0x93   :  { %v113_v52 = vsel %vm1104_vm0, %v1058_v4, %v887_v49  ;;  %v112_v54 = vsel %vm1104_vm0, %v1053_v3, %v888_v48 }
  0x94   :  { %173 = vmatpush.msra.mxu0 %v101_v47  ;;  %836 = vmatpush.msra.mxu1 %v113_v52  ;;  %v111_v57 = vsel %vm1104_vm0, %v1085_v9, %v892_v51  ;;  %v110_v58 = vsel %vm1104_vm0, %v1080_v8, %v893_v53 }
  0x96   :  { %174 = vmatpush.msra.mxu0 %v100_v56  ;;  %837 = vmatpush.msra.mxu1 %v112_v54 }
  0x97   :  { %175 = vmatmul.f32.vlgmr.msra.gmra.mxu0 %v118_v55 }
  0x98   :  { %207 = vmatpush.msrb.mxu0 %v1006_v15  ;;  %838 = vmatpush.msra.mxu1 %v111_v57 }
  0x9a   :  { %208 = vmatpush.msrb.mxu0 %v117_v20  ;;  %839 = vmatpush.msra.mxu1 %v110_v58 }
  0x9b   :  { %760 = vmatmul.msk.f32.vlgmr.msra.gmra.mxu1 %vm134_vm2, %v125_v59 }
  0x9c   :  { %209 = vmatpush.msrb.mxu0 %v116_v22 }
  0x9e   :  { %210 = vmatpush.msrb.mxu0 %v115_v30 }
  0x9f   :  { %178 = vmatmul.f32.gmra.mxu0 %v120_v60 }
  0xa0   :  { %211 = vmatpush.msrb.mxu0 %v114_v32 }
  0xa2   :  { %212 = vmatpush.msrb.mxu0 %v113_v52 }
  0xa3   :  { %761 = vmatmul.msk.f32.gmra.mxu1 %vm134_vm2, %v127_v61 }
  0xa4   :  { %213 = vmatpush.msrb.mxu0 %v112_v54 }
  0xa6   :  { %214 = vmatpush.msrb.mxu0 %v111_v57 }
  0xa7   :  { %181 = vmatmul.f32.gmra.mxu0 %v122_v62 }
  0xa8   :  { %215 = vmatpush.msrb.mxu0 %v110_v58 }
  0xab   :  { %762 = vmatmul.msk.f32.gmra.mxu1 %vm134_vm2, %v129_v63 }
  0xaf   :  { %184 = vmatmul.f32.gmra.mxu0 %v124_v2 }
  0xb3   :  { %763 = vmatmul.msk.f32.gmra.mxu1 %vm134_vm2, %v131_v5 }
  0xb7   :  { %187 = vmatmul.f32.gmra.mxu0 %v126_v10 }
  0xbb   :  { %764 = vmatmul.msk.f32.gmra.mxu1 %vm134_vm2, %v133_v11 }
  0xbf   :  { %190 = vmatmul.f32.gmra.mxu0 %v128_v12 }
  0xc7   :  { %193 = vmatmul.f32.gmra.mxu0 %v130_v13 }
  0xcf   :  { %196 = vmatmul.f32.gmra.mxu0 %v132_v14 }
  0xd7   :  { %757 = vmatmul.msk.f32.vlgmr.msrb.gmra.mxu0 %vm134_vm2, %v119_v16 }
  0xdf   :  { %758 = vmatmul.msk.f32.gmra.mxu0 %vm134_vm2, %v121_v17 }
  0xe7   :  { %759 = vmatmul.msk.f32.gmra.mxu0 %vm134_vm2, %v123_v18 }
 0x114   :  { %v176_v20 = vpop.f32.mrf.mxu0 }
 0x118   :  { %v226_v22 = vpop.f32.mrf.mxu1 }
 0x11c   :  { %v179_v21 = vpop.f32.mrf.mxu0 }
 0x120   :  { %v229_v26 = vpop.f32.mrf.mxu1 }
 0x124   :  { %v182_v23 = vpop.f32.mrf.mxu0 }
 0x128   :  { %v232_v28 = vpop.f32.mrf.mxu1 }
 0x12c   :  { %v185_v25 = vpop.f32.mrf.mxu0 }
 0x130   :  { %v235_v34 = vpop.f32.mrf.mxu1 }
 0x134   :  { %v188_v27 = vpop.f32.mrf.mxu0 }
 0x135   :  { %v230_v29 = vadd.f32 %v229_v26, %v188_v27 }
 0x137   :  { %v245_v31 = vmax.f32 %v230_v29, 0.0 }
 0x138   :  { %v238_v40 = vpop.f32.mrf.mxu1 }
 0x139   :  { %v1218_v35 = vadd.f32 %v245_v31, %v1068_v6 }
 0x13c   :  { %v191_v30 = vpop.f32.mrf.mxu0 }
 0x13d   :  { %v233_v32 = vadd.f32 %v232_v28, %v191_v30  ;;  %v765_v30 = vld [vmem:[%s1628_s1 + $0x80] sm:$0xff] }
 0x13f   :  { %v246_v33 = vmax.f32 %v233_v32, 0.0 }
 0x141   :  { %v1221_v36 = vadd.f32 %v246_v33, %v1073_v7  ;;  %v227_v7 = vadd.f32 %v226_v22, %v185_v25 }
 0x143   :  { %v899_v37 = vpack.i.bf16 %v1218_v35, %v1221_v36  ;;  %v244_v48 = vmax.f32 %v227_v7, 0.0 }
 0x144   :  { %v194_v38 = vpop.f32.mrf.mxu0 }
 0x145   :  { %900 = vrot.lane.b32.xlu0 %v899_v37, %s1004_s29  ;;  %v236_v39 = vadd.f32 %v235_v34, %v194_v38 }
 0x147   :  { %v247_v42 = vmax.f32 %v236_v39, 0.0 }
 0x149   :  { %v1227_v45 = vadd.f32 %v247_v42, %v1041_v0 }
 0x14c   :  { %v197_v41 = vpop.f32.mrf.mxu0 }
 0x14d   :  { %v239_v43 = vadd.f32 %v238_v40, %v197_v41 }
 0x14f   :  { %v248_v44 = vmax.f32 %v239_v43, 0.0  ;;  %v767_v43 = vld [vmem:[%s1628_s1 + $0x90] sm:$0xff] }
 0x151   :  { %v1230_v6 = vadd.f32 %v248_v44, %v1046_v1  ;;  %v1240_v1 = vadd.f32 %v244_v48, %v1058_v4 }
 0x153   :  { %346 = vmatpush.msra.mxu2 %v1230_v6  ;;  %v914_v46 = vpack.i.bf16 %v1227_v45, %v1230_v6 }
 0x154   :  { %v217_v47 = vpop.f32.mrf.mxu0 }
 0x155   :  { %915 = vrot.lane.b32.xlu0 %v914_v46, %s1005_s30  ;;  %895 = vrot.lane.b32.xlu2 %v914_v46, %s1004_s29  ;;  %v218_v0 = vadd.f32 %v217_v47, %v176_v20  ;;  %v772_v47 = vld [vmem:[%s1628_s1 + $0xb8] sm:$0xff] }
 0x156   :  { %347 = vmatpush.msra.mxu2 %v1227_v45 }
 0x157   :  { %v241_v50 = vmax.f32 %v218_v0, 0.0  ;;  %v769_v0 = vld [vmem:[%s1628_s1 + $0xa0] sm:$0xff] }
 0x158   :  { %348 = vmatpush.msra.mxu2 %v1221_v36 }
 0x159   :  { %v1245_v53 = vadd.f32 %v241_v50, %v1080_v8  ;;  %v771_v50 = vld [vmem:[%s1628_s1 + $0xb0] sm:$0xff] }
 0x15a   :  { %349 = vmatpush.msra.mxu2 %v1218_v35 }
 0x15c   :  { %350 = vmatpush.msra.mxu2 %v1240_v1  ;;  %v220_v49 = vpop.f32.mrf.mxu0 }
 0x15d   :  { %v221_v51 = vadd.f32 %v220_v49, %v179_v21  ;;  %v774_v49 = vld [vmem:[%s1628_s1 + $0xc8] sm:$0xff] }
 0x15f   :  { %v242_v52 = vmax.f32 %v221_v51, 0.0  ;;  %v776_v51 = vld [vmem:[%s1628_s1 + $0xd8] sm:$0xff] }
 0x161   :  { %v1248_v54 = vadd.f32 %v242_v52, %v1085_v9  ;;  %v778_v52 = vld [vmem:[%s1628_s1 + $0xe8] sm:$0xff] }
 0x163   :  { %v929_v55 = vpack.i.bf16 %v1245_v53, %v1248_v54 }
 0x164   :  { %v223_v56 = vpop.f32.mrf.mxu0 }
 0x165   :  { %v224_v4 = vadd.f32 %v223_v56, %v182_v23  ;;  %930 = vrot.lane.b32.xlu0 %v929_v55, %s1005_s30  ;;  %910 = vrot.lane.b32.xlu2 %v929_v55, %s1004_s29  ;;  %v775_v55 = vld [vmem:[%s1628_s1 + $0xd0] sm:$0xff]  ;;  %v780_v56 = vld [vmem:[%s1628_s1 + $0xf8] sm:$0xff] }
 0x167   :  { %v243_v57 = vmax.f32 %v224_v4, 0.0  ;;  %v777_v4 = vld [vmem:[%s1628_s1 + $0xe0] sm:$0xff] }
 0x169   :  { %v1255_v58 = vadd.f32 %v243_v57, %v1053_v3  ;;  %v779_v57 = vld [vmem:[%s1628_s1 + $0xf0] sm:$0xff] }
 0x16b   :  { %351 = vmatpush.msra.mxu2 %v1255_v58  ;;  %v904_v8 = vpack.i.bf16 %v1255_v58, %v1240_v1 }
 0x16d   :  { %905 = vrot.lane.b32.xlu1 %v904_v8, %s1004_s29  ;;  %352 = vmatpush.msra.mxu2 %v1248_v54 }
 0x16e   :  { %925 = vrot.lane.b32.xlu2 %v904_v8, %s1005_s30  ;;  %v766_v8 = vld [vmem:[%s1628_s1 + $0x88] sm:$0xff] }
 0x16f   :  { %353 = vmatpush.msra.mxu2 %v1245_v53 }
 0x175   :  { %920 = vrot.lane.b32.xlu1 %v899_v37, %s1005_s30 }
 0x1af   :  { %v896_v9 = vpop.permute.xlu2 %895 }
 0x1b0   :  { %v898_v59 = vunpack.i.h.bf16 %v896_v9  ;;  %v897_v60 = vunpack.i.l.bf16 %v896_v9  ;;  %v768_v9 = vld [vmem:[%s1628_s1 + $0x98] sm:$0xff] }
 0x1b2   :  { %v296_v3 = vsel %vm1114_vm1, %v1230_v6, %v897_v60  ;;  %v295_v61 = vsel %vm1114_vm1, %v1227_v45, %v898_v59  ;;  %v770_v59 = vld [vmem:[%s1628_s1 + $0xa8] sm:$0xff] }
 0x1b3   :  { %354 = vmatpush.msra.mxu2 %v296_v3 }
 0x1b5   :  { %355 = vmatpush.msra.mxu2 %v295_v61 }
 0x1b7   :  { %v901_v62 = vpop.permute.xlu0 %900 }
 0x1b8   :  { %v903_v63 = vunpack.i.h.bf16 %v901_v62  ;;  %v902_v2 = vunpack.i.l.bf16 %v901_v62 }
 0x1ba   :  { %v294_v5 = vsel %vm1114_vm1, %v1221_v36, %v902_v2  ;;  %v293_v10 = vsel %vm1114_vm1, %v1218_v35, %v903_v63 }
 0x1bb   :  { %356 = vmatpush.msra.mxu2 %v294_v5 }
 0x1bd   :  { %357 = vmatpush.msra.mxu2 %v293_v10 }
 0x1bf   :  { %v911_v17 = vpop.permute.xlu2 %910 }
 0x1c0   :  { %v912_v22 = vunpack.i.l.bf16 %v911_v17  ;;  %v913_v25 = vunpack.i.h.bf16 %v911_v17 }
 0x1c2   :  { %v290_v27 = vsel %vm1114_vm1, %v1248_v54, %v912_v22  ;;  %v289_v33 = vsel %vm1114_vm1, %v1245_v53, %v913_v25 }
 0x1c7   :  { %v916_v11 = vpop.permute.xlu0 %915 }
 0x1c8   :  { %v918_v12 = vunpack.i.h.bf16 %v916_v11  ;;  %v917_v13 = vunpack.i.l.bf16 %v916_v11  ;;  %v926_v28 = vpop.permute.xlu2 %925 }
 0x1c9   :  { %v927_v34 = vunpack.i.l.bf16 %v926_v28  ;;  %v928_v39 = vunpack.i.h.bf16 %v926_v28 }
 0x1ca   :  { %v304_v14 = vsel %vm1104_vm0, %v1230_v6, %v917_v13  ;;  %v303_v16 = vsel %vm1104_vm0, %v1227_v45, %v918_v12 }
 0x1cb   :  { %841 = vmatpush.msra.mxu3 %v304_v14  ;;  %v300_v42 = vsel %vm1104_vm0, %v1240_v1, %v927_v34  ;;  %v299_v7 = vsel %vm1104_vm0, %v1255_v58, %v928_v39 }
 0x1cd   :  { %842 = vmatpush.msra.mxu3 %v303_v16 }
 0x1d7   :  { %v931_v38 = vpop.permute.xlu0 %930 }
 0x1d8   :  { %v932_v41 = vunpack.i.l.bf16 %v931_v38  ;;  %v933_v44 = vunpack.i.h.bf16 %v931_v38 }
 0x1da   :  { %v298_v46 = vsel %vm1104_vm0, %v1248_v54, %v932_v41  ;;  %v297_v48 = vsel %vm1104_vm0, %v1245_v53, %v933_v44 }
 0x1df   :  { %v906_v18 = vpop.permute.xlu1 %905 }
 0x1e0   :  { %v908_v20 = vunpack.i.h.bf16 %v906_v18  ;;  %v907_v21 = vunpack.i.l.bf16 %v906_v18 }
 0x1e2   :  { %v292_v23 = vsel %vm1114_vm1, %v1240_v1, %v907_v21  ;;  %v291_v26 = vsel %vm1114_vm1, %v1255_v58, %v908_v20 }
 0x1e3   :  { %358 = vmatpush.msra.mxu2 %v292_v23 }
 0x1e5   :  { %359 = vmatpush.msra.mxu2 %v291_v26 }
 0x1e7   :  { %v921_v29 = vpop.permute.xlu1 %920  ;;  %360 = vmatpush.msra.mxu2 %v290_v27 }
 0x1e8   :  { %v923_v31 = vunpack.i.h.bf16 %v921_v29  ;;  %v922_v32 = vunpack.i.l.bf16 %v921_v29 }
 0x1e9   :  { %361 = vmatpush.msra.mxu2 %v289_v33 }
 0x1ea   :  { %362 = vmatmul.f32.vlgmr.msra.gmra.mxu2 %v765_v30  ;;  %v302_v37 = vsel %vm1104_vm0, %v1221_v36, %v922_v32  ;;  %v301_v40 = vsel %vm1104_vm0, %v1218_v35, %v923_v31 }
 0x1eb   :  { %394 = vmatpush.msrb.mxu2 %v1006_v15  ;;  %843 = vmatpush.msra.mxu3 %v302_v37 }
 0x1ed   :  { %395 = vmatpush.msrb.mxu2 %v304_v14  ;;  %844 = vmatpush.msra.mxu3 %v301_v40 }
 0x1ef   :  { %396 = vmatpush.msrb.mxu2 %v303_v16  ;;  %845 = vmatpush.msra.mxu3 %v300_v42 }
 0x1f1   :  { %397 = vmatpush.msrb.mxu2 %v302_v37  ;;  %846 = vmatpush.msra.mxu3 %v299_v7 }
 0x1f2   :  { %365 = vmatmul.f32.gmra.mxu2 %v767_v43 }
 0x1f3   :  { %398 = vmatpush.msrb.mxu2 %v301_v40  ;;  %847 = vmatpush.msra.mxu3 %v298_v46 }
 0x1f5   :  { %399 = vmatpush.msrb.mxu2 %v300_v42  ;;  %848 = vmatpush.msra.mxu3 %v297_v48 }
 0x1f6   :  { %784 = vmatmul.msk.f32.vlgmr.msra.gmra.mxu3 %vm134_vm2, %v772_v47 }
 0x1f7   :  { %400 = vmatpush.msrb.mxu2 %v299_v7  ;;  %581 = vmatpush.msrb.mxu3 %v1006_v15  ;;  %v773_v15 = vld [vmem:[%s1628_s1 + $0xc0] sm:$0xff] }
 0x1f9   :  { %401 = vmatpush.msrb.mxu2 %v298_v46 }
 0x1fa   :  { %368 = vmatmul.f32.gmra.mxu2 %v769_v0 }
 0x1fb   :  { %402 = vmatpush.msrb.mxu2 %v297_v48 }
 0x1fe   :  { %785 = vmatmul.msk.f32.gmra.mxu3 %vm134_vm2, %v774_v49 }
 0x202   :  { %371 = vmatmul.f32.gmra.mxu2 %v771_v50 }
 0x206   :  { %786 = vmatmul.msk.f32.gmra.mxu3 %vm134_vm2, %v776_v51 }
 0x20a   :  { %374 = vmatmul.f32.gmra.mxu2 %v773_v15 }
 0x20e   :  { %787 = vmatmul.msk.f32.gmra.mxu3 %vm134_vm2, %v778_v52 }
 0x212   :  { %377 = vmatmul.f32.gmra.mxu2 %v775_v55 }
 0x216   :  { %788 = vmatmul.msk.f32.gmra.mxu3 %vm134_vm2, %v780_v56 }
 0x21a   :  { %380 = vmatmul.f32.gmra.mxu2 %v777_v4 }
 0x222   :  { %383 = vmatmul.f32.gmra.mxu2 %v779_v57 }
 0x22a   :  { %781 = vmatmul.msk.f32.vlgmr.msrb.gmra.mxu2 %vm134_vm2, %v766_v8 }
 0x232   :  { %782 = vmatmul.msk.f32.gmra.mxu2 %vm134_vm2, %v768_v9 }
 0x23a   :  { %783 = vmatmul.msk.f32.gmra.mxu2 %vm134_vm2, %v770_v59 }
 0x26d   :  { %v363_v60 = vpop.f32.mrf.mxu2 }
 0x275   :  { %v366_v3 = vpop.f32.mrf.mxu2 }
 0x279   :  { %v413_v61 = vpop.f32.mrf.mxu3 }
 0x27d   :  { %v369_v62 = vpop.f32.mrf.mxu2 }
 0x281   :  { %v416_v2 = vpop.f32.mrf.mxu3 }
 0x285   :  { %v372_v63 = vpop.f32.mrf.mxu2 }
 0x286   :  { %v414_v30 = vadd.f32 %v413_v61, %v372_v63 }
 0x288   :  { %v431_v33 = vmax.f32 %v414_v30, 0.0  ;;  %v792_v30 = vld [vmem:[%s1628_s1 + $0x118] sm:$0xff] }
 0x289   :  { %v419_v10 = vpop.f32.mrf.mxu3 }
 0x28d   :  { %v375_v5 = vpop.f32.mrf.mxu2 }
 0x28e   :  { %v417_v11 = vadd.f32 %v416_v2, %v375_v5 }
 0x290   :  { %v432_v13 = vmax.f32 %v417_v11, 0.0 }
 0x291   :  { %v422_v17 = vpop.f32.mrf.mxu3 }
 0x292   :  { %v1372_v18 = vadd.f32 %v432_v13, %v1218_v35 }
 0x295   :  { %v378_v12 = vpop.f32.mrf.mxu2 }
 0x296   :  { %v420_v14 = vadd.f32 %v419_v10, %v378_v12 }
 0x298   :  { %v433_v16 = vmax.f32 %v420_v14, 0.0 }
 0x299   :  { %v425_v25 = vpop.f32.mrf.mxu3 }
 0x29a   :  { %v1375_v20 = vadd.f32 %v433_v16, %v1221_v36 }
 0x29c   :  { %v934_v21 = vpack.i.bf16 %v1372_v18, %v1375_v20 }
 0x29d   :  { %v381_v22 = vpop.f32.mrf.mxu2 }
 0x29e   :  { %935 = vrot.lane.b32.xlu2 %v934_v21, %s1005_s30  ;;  %v423_v23 = vadd.f32 %v422_v17, %v381_v22  ;;  %v790_v17 = vld [vmem:[%s1628_s1 + $0x108] sm:$0xff] }
 0x2a0   :  { %v434_v27 = vmax.f32 %v423_v23, 0.0 }
 0x2a2   :  { %v1382_v35 = vadd.f32 %v434_v27, %v1227_v45 }
 0x2a5   :  { %v384_v26 = vpop.f32.mrf.mxu2 }
 0x2a6   :  { %v426_v28 = vadd.f32 %v425_v25, %v384_v26  ;;  %940 = vrot.lane.b32.xlu2 %v934_v21, %s1004_s29 }
 0x2a8   :  { %v435_v29 = vmax.f32 %v426_v28, 0.0 }
 0x2aa   :  { %v1385_v36 = vadd.f32 %v435_v29, %v1230_v6  ;;  %v1395_v6 = vadd.f32 %v431_v33, %v1240_v1  ;;  %v789_v29 = vld [vmem:[%s1628_s1 + $0x100] sm:$0xff]  ;;  %v794_v33 = vld [vmem:[%s1628_s1 + $0x128] sm:$0xff] }
 0x2ac   :  { %533 = vmatpush.msrb.mxu1 %v1385_v36  ;;  %v949_v31 = vpack.i.bf16 %v1382_v35, %v1385_v36 }
 0x2ad   :  { %v404_v32 = vpop.f32.mrf.mxu2 }
 0x2ae   :  { %950 = vrot.lane.b32.xlu0 %v949_v31, %s1004_s29  ;;  %945 = vrot.lane.b32.xlu1 %v949_v31, %s1005_s30  ;;  %v405_v45 = vadd.f32 %v404_v32, %v363_v60  ;;  %v791_v32 = vld [vmem:[%s1628_s1 + $0x110] sm:$0xff] }
 0x2af   :  { %534 = vmatpush.msrb.mxu1 %v1382_v35 }
 0x2b0   :  { %v428_v37 = vmax.f32 %v405_v45, 0.0  ;;  %v796_v45 = vld [vmem:[%s1628_s1 + $0x138] sm:$0xff] }
 0x2b1   :  { %535 = vmatpush.msrb.mxu1 %v1375_v20 }
 0x2b2   :  { %v1400_v40 = vadd.f32 %v428_v37, %v1245_v53  ;;  %v798_v37 = vld [vmem:[%s1628_s1 + $0x148] sm:$0xff] }
 0x2b3   :  { %536 = vmatpush.msrb.mxu1 %v1372_v18 }
 0x2b5   :  { %537 = vmatpush.msrb.mxu1 %v1395_v6  ;;  %v407_v34 = vpop.f32.mrf.mxu2 }
 0x2b6   :  { %v408_v38 = vadd.f32 %v407_v34, %v366_v3  ;;  %v795_v34 = vld [vmem:[%s1628_s1 + $0x130] sm:$0xff] }
 0x2b8   :  { %v429_v39 = vmax.f32 %v408_v38, 0.0  ;;  %v797_v38 = vld [vmem:[%s1628_s1 + $0x140] sm:$0xff] }
 0x2ba   :  { %v1403_v41 = vadd.f32 %v429_v39, %v1248_v54  ;;  %v800_v39 = vld [vmem:[%s1628_s1 + $0x158] sm:$0xff] }
 0x2bc   :  { %v969_v42 = vpack.i.bf16 %v1400_v40, %v1403_v41 }
 0x2bd   :  { %v410_v43 = vpop.f32.mrf.mxu2 }
 0x2be   :  { %v411_v1 = vadd.f32 %v410_v43, %v369_v62  ;;  %970 = vrot.lane.b32.xlu2 %v969_v42, %s1004_s29  ;;  %960 = vrot.lane.b32.xlu0 %v969_v42, %s1005_s30  ;;  %v799_v42 = vld [vmem:[%s1628_s1 + $0x150] sm:$0xff]  ;;  %v802_v43 = vld [vmem:[%s1628_s1 + $0x168] sm:$0xff] }
 0x2c0   :  { %v430_v44 = vmax.f32 %v411_v1, 0.0  ;;  %v801_v1 = vld [vmem:[%s1628_s1 + $0x160] sm:$0xff] }
 0x2c2   :  { %v1410_v7 = vadd.f32 %v430_v44, %v1255_v58  ;;  %v804_v44 = vld [vmem:[%s1628_s1 + $0x178] sm:$0xff] }
 0x2c4   :  { %538 = vmatpush.msrb.mxu1 %v1410_v7  ;;  %v954_v53 = vpack.i.bf16 %v1410_v7, %v1395_v6 }
 0x2c6   :  { %955 = vrot.lane.b32.xlu1 %v954_v53, %s1005_s30  ;;  %539 = vmatpush.msrb.mxu1 %v1403_v41 }
 0x2c8   :  { %540 = vmatpush.msrb.mxu1 %v1400_v40 }
 0x2ce   :  { %965 = vrot.lane.b32.xlu1 %v954_v53, %s1004_s29  ;;  %v803_v53 = vld [vmem:[%s1628_s1 + $0x170] sm:$0xff]  ;;  %s1533_s1 = sld [smem:[#allocation2 + $0x81]] }
 0x2f8   :  { %v936_v54 = vpop.permute.xlu2 %935 }
 0x2f9   :  { %v937_v51 = vunpack.i.l.bf16 %v936_v54  ;;  %v938_v56 = vunpack.i.h.bf16 %v936_v54 }
 0x2fb   :  { %v489_v59 = vsel %vm1104_vm0, %v1375_v20, %v937_v51  ;;  %v488_v3 = vsel %vm1104_vm0, %v1372_v18, %v938_v56 }
 0x300   :  { %v941_v46 = vpop.permute.xlu2 %940 }
 0x301   :  { %v942_v15 = vunpack.i.l.bf16 %v941_v46  ;;  %v943_v4 = vunpack.i.h.bf16 %v941_v46 }
 0x303   :  { %v481_v9 = vsel %vm1114_vm1, %v1375_v20, %v942_v15  ;;  %v480_v60 = vsel %vm1114_vm1, %v1372_v18, %v943_v4 }
 0x318   :  { %v971_v14 = vpop.permute.xlu2 %970 }
 0x319   :  { %v972_v25 = vunpack.i.l.bf16 %v971_v14  ;;  %v973_v27 = vunpack.i.h.bf16 %v971_v14 }
 0x31b   :  { %v477_v19 = vsel %vm1114_vm1, %v1403_v41, %v972_v25  ;;  %v476_v31 = vsel %vm1114_vm1, %v1400_v40, %v973_v27  ;;  %v704_v27 = vstv %s1543_s6 }
 0x320   :  { %v951_v47 = vpop.permute.xlu0 %950  ;;  %v946_v48 = vpop.permute.xlu1 %945 }
 0x321   :  { %v953_v0 = vunpack.i.h.bf16 %v951_v47  ;;  %v952_v58 = vunpack.i.l.bf16 %v951_v47  ;;  %v948_v49 = vunpack.i.h.bf16 %v946_v48  ;;  %v947_v50 = vunpack.i.l.bf16 %v946_v48 }
 0x323   :  { %v483_v52 = vsel %vm1114_vm1, %v1385_v36, %v952_v58  ;;  %v491_v55 = vsel %vm1104_vm0, %v1385_v36, %v947_v50  ;;  %v482_v57 = vsel %vm1114_vm1, %v1382_v35, %v953_v0  ;;  %v490_v8 = vsel %vm1104_vm0, %v1382_v35, %v948_v49 }
 0x324   :  { %541 = vmatpush.msrb.mxu1 %v483_v52  ;;  %582 = vmatpush.msrb.mxu3 %v491_v55 }
 0x326   :  { %542 = vmatpush.msrb.mxu1 %v482_v57  ;;  %583 = vmatpush.msrb.mxu3 %v490_v8 }
 0x328   :  { %543 = vmatpush.msrb.mxu1 %v481_v9  ;;  %584 = vmatpush.msrb.mxu3 %v489_v59 }
 0x32a   :  { %544 = vmatpush.msrb.mxu1 %v480_v60  ;;  %585 = vmatpush.msrb.mxu3 %v488_v3  ;;  %v632_v3 = vstv %s1523_s23 }
 0x330   :  { %v961_v61 = vpop.permute.xlu0 %960 }
 0x331   :  { %v962_v5 = vunpack.i.l.bf16 %v961_v61  ;;  %v963_v11 = vunpack.i.h.bf16 %v961_v61 }
 0x333   :  { %v485_v13 = vsel %vm1104_vm0, %v1403_v41, %v962_v5  ;;  %v484_v23 = vsel %vm1104_vm0, %v1400_v40, %v963_v11  ;;  %v638_v11 = vstv %s1531_s3 }
 0x338   :  { %v956_v62 = vpop.permute.xlu1 %955 }
 0x339   :  { %v958_v63 = vunpack.i.h.bf16 %v956_v62  ;;  %v957_v2 = vunpack.i.l.bf16 %v956_v62  ;;  %v662_v62 = vstv %s1525_s24 }
 0x33b   :  { %v487_v10 = vsel %vm1104_vm0, %v1395_v6, %v957_v2  ;;  %v486_v12 = vsel %vm1104_vm0, %v1410_v7, %v958_v63  ;;  %v692_v63 = vstv %s1527_s2  ;;  %v722_v2 = vstv %s1529_s25 }
 0x33c   :  { %586 = vmatpush.msrb.mxu3 %v487_v10 }
 0x33e   :  { %587 = vmatpush.msrb.mxu3 %v486_v12  ;;  %v698_v12 = vstv %s1535_s26 }
 0x340   :  { %v966_v16 = vpop.permute.xlu1 %965  ;;  %588 = vmatpush.msrb.mxu3 %v485_v13 }
 0x341   :  { %v968_v21 = vunpack.i.h.bf16 %v966_v16  ;;  %v967_v22 = vunpack.i.l.bf16 %v966_v16  ;;  %v728_v16 = vstv %s1537_s27 }
 0x342   :  { %589 = vmatpush.msrb.mxu3 %v484_v23 }
 0x343   :  { %v479_v26 = vsel %vm1114_vm1, %v1395_v6, %v967_v22  ;;  %805 = vmatmul.msk.f32.vlgmr.msrb.gmra.mxu3 %vm134_vm2, %v790_v17  ;;  %v478_v28 = vsel %vm1114_vm1, %v1410_v7, %v968_v21  ;;  %v644_v17 = vstv %s1539_s28 }
 0x344   :  { %545 = vmatpush.msrb.mxu1 %v479_v26  ;;  %v674_v26 = vstv %s1541_s5 }
 0x346   :  { %546 = vmatpush.msrb.mxu1 %v478_v28  ;;  %v734_v28 = vstv %s1545_s7 }
 0x348   :  { %547 = vmatpush.msrb.mxu1 %v477_v19 }
 0x34a   :  { %548 = vmatpush.msrb.mxu1 %v476_v31 }
 0x34b   :  { %549 = vmatmul.f32.vlgmr.msrb.gmra.mxu1 %v789_v29  ;;  %806 = vmatmul.msk.f32.gmra.mxu3 %vm134_vm2, %v792_v30 }
 0x353   :  { %552 = vmatmul.f32.gmra.mxu1 %v791_v32  ;;  %807 = vmatmul.msk.f32.gmra.mxu3 %vm134_vm2, %v794_v33 }
 0x35b   :  { %555 = vmatmul.f32.gmra.mxu1 %v793_v24  ;;  %808 = vmatmul.msk.f32.gmra.mxu3 %vm134_vm2, %v796_v45 }
 0x363   :  { %558 = vmatmul.f32.gmra.mxu1 %v795_v34  ;;  %809 = vmatmul.msk.f32.gmra.mxu3 %vm134_vm2, %v798_v37 }
 0x36b   :  { %561 = vmatmul.f32.gmra.mxu1 %v797_v38  ;;  %810 = vmatmul.msk.f32.gmra.mxu3 %vm134_vm2, %v800_v39  ;;  %v650_v38 = vstv %s1547_s8  ;;  %v680_v39 = vstv %s1550_s9 }
 0x373   :  { %564 = vmatmul.f32.gmra.mxu1 %v799_v42  ;;  %811 = vmatmul.msk.f32.gmra.mxu3 %vm134_vm2, %v802_v43 }
 0x37b   :  { %567 = vmatmul.f32.gmra.mxu1 %v801_v1  ;;  %812 = vmatmul.msk.f32.gmra.mxu3 %vm134_vm2, %v804_v44  ;;  %v710_v1 = vstv %s1553_s10  ;;  %v740_v44 = vstv %s1558_s11 }
 0x383   :  { %570 = vmatmul.f32.gmra.mxu1 %v803_v53 }
 0x3c6   :  { %v591_v54 = vpop.f32.mrf.mxu3 }
 0x3c8   :  { %v550_v46 = vpop.f32.mrf.mxu1 }
 0x3c9   :  { %v592_v15 = vadd.f32 %v591_v54, %v550_v46 }
 0x3cb   :  { %v615_v56 = vmax.f32 %v592_v15, 0.0  ;;  %v656_v15 = vstv %s1564_s12 }
 0x3cd   :  { %v623_v59 = vadd.f32 %v615_v56, %v1400_v40  ;;  %v668_v40 = vstv %s1533_s1 }
 0x3ce   :  { %v594_v47 = vpop.f32.mrf.mxu3 }
 0x3cf   :  { %v633_v13 = vmul.f32 %v632_v3, %v623_v59  ;;  %v663_v21 = vmul.f32 %v662_v62, %v623_v59  ;;  %v693_v22 = vmul.f32 %v692_v63, %v623_v59  ;;  %v723_v23 = vmul.f32 %v722_v2, %v623_v59 }
 0x3d0   :  { %v553_v48 = vpop.f32.mrf.mxu1 }
 0x3d1   :  { %v595_v55 = vadd.f32 %v594_v47, %v553_v48 }
 0x3d3   :  { %v616_v8 = vmax.f32 %v595_v55, 0.0 }
 0x3d5   :  { %v624_v10 = vadd.f32 %v616_v8, %v1403_v41 }
 0x3d6   :  { %v597_v0 = vpop.f32.mrf.mxu3 }
 0x3d7   :  { %v664_v19 = vmul.f32 %v662_v62, %v624_v10  ;;  %v694_v29 = vmul.f32 %v692_v63, %v624_v10  ;;  %v724_v32 = vmul.f32 %v722_v2, %v624_v10 }
 0x3d8   :  { %v556_v58 = vpop.f32.mrf.mxu1 }
 0x3d9   :  { %v598_v4 = vadd.f32 %v597_v0, %v556_v58 }
 0x3db   :  { %v617_v60 = vmax.f32 %v598_v4, 0.0  ;;  %v716_v4 = vstv %s1571_s13 }
 0x3dd   :  { %v625_v14 = vadd.f32 %v617_v60, %v1410_v7  ;;  %v634_v7 = vmul.f32 %v632_v3, %v624_v10 }
 0x3de   :  { %v600_v49 = vpop.f32.mrf.mxu3 }
 0x3df   :  { %v639_v33 = vmul.f32 %v638_v11, %v625_v14  ;;  %v669_v24 = vmul.f32 %v668_v40, %v625_v14  ;;  %v699_v45 = vmul.f32 %v698_v12, %v625_v14 }
 0x3e0   :  { %v559_v50 = vpop.f32.mrf.mxu1 }
 0x3e1   :  { %v601_v25 = vadd.f32 %v600_v49, %v559_v50  ;;  %v641_v48 = vadd.f32 %v639_v33, %v633_v13  ;;  %v671_v0 = vadd.f32 %v669_v24, %v663_v21  ;;  %v701_v58 = vadd.f32 %v699_v45, %v693_v22 }
 0x3e3   :  { %v618_v34 = vmax.f32 %v601_v25, 0.0 }
 0x3e6   :  { %v603_v51 = vpop.f32.mrf.mxu3 }
 0x3e8   :  { %v562_v52 = vpop.f32.mrf.mxu1 }
 0x3e9   :  { %v604_v57 = vadd.f32 %v603_v51, %v562_v52  ;;  %v626_v51 = vadd.f32 %v618_v34, %v1395_v6  ;;  %v686_v52 = vstv %s1569_s0 }
 0x3eb   :  { %v619_v5 = vmax.f32 %v604_v57, 0.0  ;;  %v746_v57 = vstv %s1577_s14  ;;  %v640_v2 = vmul.f32 %v638_v11, %v626_v51  ;;  %v700_v10 = vmul.f32 %v698_v12, %v626_v51 }
 0x3ec   :  { %v730_v13 = vmul.f32 %v728_v16, %v626_v51 }
 0x3ed   :  { %v627_v41 = vadd.f32 %v619_v5, %v1372_v18  ;;  %v729_v18 = vmul.f32 %v728_v16, %v625_v14  ;;  %v670_v5 = vmul.f32 %v668_v40, %v626_v51  ;;  %v642_v40 = vadd.f32 %v640_v2, %v634_v7 }
 0x3ee   :  { %v606_v9 = vpop.f32.mrf.mxu3  ;;  %v702_v16 = vadd.f32 %v700_v10, %v694_v29  ;;  %v732_v34 = vadd.f32 %v730_v13, %v724_v32 }
 0x3ef   :  { %v645_v42 = vmul.f32 %v644_v17, %v627_v41  ;;  %v675_v53 = vmul.f32 %v674_v26, %v627_v41  ;;  %v705_v54 = vmul.f32 %v704_v27, %v627_v41  ;;  %v735_v46 = vmul.f32 %v734_v28, %v627_v41 }
 0x3f0   :  { %v565_v61 = vpop.f32.mrf.mxu1  ;;  %v731_v50 = vadd.f32 %v729_v18, %v723_v23  ;;  %v672_v12 = vadd.f32 %v670_v5, %v664_v19 }
 0x3f1   :  { %v607_v30 = vadd.f32 %v606_v9, %v565_v61  ;;  %v647_v55 = vadd.f32 %v645_v42, %v641_v48  ;;  %v677_v8 = vadd.f32 %v675_v53, %v671_v0  ;;  %v707_v9 = vadd.f32 %v705_v54, %v701_v58 }
 0x3f2   :  { %v737_v59 = vadd.f32 %v735_v46, %v731_v50 }
 0x3f3   :  { %v620_v47 = vmax.f32 %v607_v30, 0.0 }
 0x3f5   :  { %v628_v60 = vadd.f32 %v620_v47, %v1375_v20 }
 0x3f6   :  { %v609_v31 = vpop.f32.mrf.mxu3 }
 0x3f7   :  { %v646_v25 = vmul.f32 %v644_v17, %v628_v60  ;;  %v676_v41 = vmul.f32 %v674_v26, %v628_v60  ;;  %v706_v20 = vmul.f32 %v704_v27, %v628_v60 }
 0x3f8   :  { %v568_v37 = vpop.f32.mrf.mxu1 }
 0x3f9   :  { %v610_v43 = vadd.f32 %v609_v31, %v568_v37  ;;  %v736_v31 = vmul.f32 %v734_v28, %v628_v60  ;;  %v648_v26 = vadd.f32 %v646_v25, %v642_v40  ;;  %v678_v27 = vadd.f32 %v676_v41, %v672_v12 }
 0x3fa   :  { %v708_v28 = vadd.f32 %v706_v20, %v702_v16 }
 0x3fb   :  { %v621_v49 = vmax.f32 %v610_v43, 0.0  ;;  %v738_v37 = vadd.f32 %v736_v31, %v732_v34 }
 0x3fd   :  { %v629_v56 = vadd.f32 %v621_v49, %v1382_v35 }
 0x3fe   :  { %v612_v6 = vpop.f32.mrf.mxu3 }
 0x3ff   :  { %v651_v3 = vmul.f32 %v650_v38, %v629_v56  ;;  %v681_v61 = vmul.f32 %v680_v39, %v629_v56  ;;  %v711_v62 = vmul.f32 %v710_v1, %v629_v56  ;;  %v741_v63 = vmul.f32 %v740_v44, %v629_v56 }
 0x400   :  { %v571_v35 = vpop.f32.mrf.mxu1 }
 0x401   :  { %v653_v14 = vadd.f32 %v651_v3, %v647_v55  ;;  %v683_v21 = vadd.f32 %v681_v61, %v677_v8  ;;  %v713_v22 = vadd.f32 %v711_v62, %v707_v9  ;;  %v743_v23 = vadd.f32 %v741_v63, %v737_v59 }
 0x402   :  { %v613_v30 = vadd.f32 %v612_v6, %v571_v35 }
 0x403   :  { %v657_v33 = vadd.f32 %v656_v15, %v653_v14  ;;  %v687_v24 = vadd.f32 %v686_v52, %v683_v21  ;;  %v717_v45 = vadd.f32 %v716_v4, %v713_v22  ;;  %v747_v18 = vadd.f32 %v746_v57, %v743_v23 }
 0x404   :  { %v622_v11 = vmax.f32 %v613_v30, 0.0 }
 0x405   :  { %659 = vst [vmem:[%s1631_s4] sm:$0xff] %v657_v33 }
 0x406   :  { %689 = vst [vmem:[%s1631_s4 + $0x10] sm:$0xff] %v687_v24  ;;  %v630_v17 = vadd.f32 %v622_v11, %v1385_v36 }
 0x407   :  { %719 = vst [vmem:[%s1631_s4 + $0x20] sm:$0xff] %v717_v45 }
 0x408   :  { %749 = vst [vmem:[%s1631_s4 + $0x30] sm:$0xff] %v747_v18  ;;  %v652_v7 = vmul.f32 %v650_v38, %v630_v17  ;;  %v682_v19 = vmul.f32 %v680_v39, %v630_v17  ;;  %v712_v29 = vmul.f32 %v710_v1, %v630_v17  ;;  %v742_v32 = vmul.f32 %v740_v44, %v630_v17 }
 0x40a   :  { %v654_v42 = vadd.f32 %v652_v7, %v648_v26  ;;  %v684_v36 = vadd.f32 %v682_v19, %v678_v27  ;;  %v714_v43 = vadd.f32 %v712_v29, %v708_v28  ;;  %v744_v53 = vadd.f32 %v742_v32, %v738_v37 }
 0x40c   :  { %v658_v54 = vadd.f32 %v656_v15, %v654_v42  ;;  %v688_v46 = vadd.f32 %v686_v52, %v684_v36  ;;  %v718_v47 = vadd.f32 %v716_v4, %v714_v43  ;;  %v748_v48 = vadd.f32 %v746_v57, %v744_v53 }
 0x40e   :  { %660 = vst [vmem:[%s1631_s4 + $0x8] sm:$0xff] %v658_v54 }
 0x40f   :  { %690 = vst [vmem:[%s1631_s4 + $0x18] sm:$0xff] %v688_v46 }
 0x410   :  { %720 = vst [vmem:[%s1631_s4 + $0x28] sm:$0xff] %v718_v47 }
 0x411   :  { %750 = vst [vmem:[%s1631_s4 + $0x38] sm:$0xff] %v748_v48 }
 0x412   :  { %755 = vsyncpa [#allocation3], 1 }
 0x413   :  { %756 = vsyncpa [#allocation5], 1 }

</bundles_post_ra>
